<compile_context>
chip_gen: v6e
topology: v6e:2x2x1
jax: 0.10.0
libtpu: 0.0.40
codegen_flags: <defaults>
</compile_context>

<pallas_src>
import numpy as np
import jax
import jax.numpy as jnp
from jax import lax
from jax.experimental import pallas as pl
from jax.experimental.pallas import tpu as pltpu


def _round_up(n, m):
    return ((n + m - 1) // m) * m


# ----------------------------- Pallas kernel --------------------------------

def _fused_score_kernel(l_ref, g_ref, out_ref):
    # l_ref:  (TB, C)    fused LHS tile  [x*x, x, 1, 0-pad]
    # g_ref:  (KC, C)    fused RHS       [a*w, -2*a*wm, b, 0-pad]
    # out_ref:(TB, KC)   out = L @ G.T   (single MXU matmul, no epilogue)
    nt = (((1,), (1,)), ((), ()))            # contract last dims: A @ B.T
    out_ref[...] = lax.dot_general(l_ref[...], g_ref[...], nt,
                                   preferred_element_type=jnp.float32)


# ------------------------- full (cross-rotation) scores ----------------------

def gaussian_log_scores(x, mu, w, log_det, scale, offset, *, block_rows=256):
    """expv[b,k,r,r'] = scale[k,r]*(-0.5*(log_det[k,r] + diff + D*log(pi))) + offset[k,r]

    with diff[b,k,r,r'] = sum_d (x[b,r',d] - mu[k,r,d])^2 * w[k,r,d].
    One fused MXU matmul per BR tile; KR and the contraction dim are padded to
    128 lanes for unmasked loads/stores.
    """
    B, R, D = x.shape
    K = mu.shape[0]
    KR, BR = K * R, B * R
    C = 2 * D + 1
    C_pad = _round_up(C, 128)
    KR_pad = _round_up(KR, 128)

    xf = x.reshape(BR, D).astype(jnp.float32)
    wf = w.reshape(KR, D).astype(jnp.float32)
    muf = mu.reshape(KR, D).astype(jnp.float32)
    wm = wf * muf                                            # w * mu
    c = jnp.sum(wm * muf, axis=-1)                           # sum_d w*mu^2, (KR,)
    a = (-0.5) * scale.reshape(KR).astype(jnp.float32)
    bvec = (offset.reshape(KR).astype(jnp.float32)
            + a * (c + log_det.reshape(KR).astype(jnp.float32) + D * np.log(np.pi)))

    # fused LHS [x*x, x, 1] and RHS [a*w, -2*a*wm, b]
    L = jnp.concatenate([xf * xf, xf, jnp.ones((BR, 1), jnp.float32)], axis=-1)
    G = jnp.concatenate([a[:, None] * wf, (-2.0) * a[:, None] * wm, bvec[:, None]],
                        axis=-1)

    # BR tiling: single resident block for small problems, pipelined tiles else
    if BR <= block_rows:
        TB = _round_up(BR, 8)
    else:
        TB = block_rows
    BR_pad = _round_up(BR, TB)

    L = jnp.pad(L, ((0, BR_pad - BR), (0, C_pad - C)))
    G = jnp.pad(G, ((0, KR_pad - KR), (0, C_pad - C)))

    out = pl.pallas_call(
        _fused_score_kernel,
        out_shape=jax.ShapeDtypeStruct((BR_pad, KR_pad), jnp.float32),
        grid=(BR_pad // TB,),
        in_specs=[
            pl.BlockSpec((TB, C_pad), lambda i: (i, 0)),       # x tile (pipelined)
            pl.BlockSpec((KR_pad, C_pad), lambda i: (0, 0)),   # G resident
        ],
        out_specs=pl.BlockSpec((TB, KR_pad), lambda i: (i, 0)),
        compiler_params=pltpu.CompilerParams(
            dimension_semantics=("parallel",),                 # v7x: shard BR tiles over TCs
            vmem_limit_bytes=32 * 1024 * 1024,
        ),
    )(L, G)

    out = out[:BR, :KR]
    # rows = (b, r_sample), cols = (k, r_mu)  ->  (B, K, R_mu, R_sample)
    return out.reshape(B, R, K, R).transpose(0, 2, 3, 1)


# --------------------- diagonal-only (E-step) scores --------------------------

def gaussian_log_scores_diag(x, mu, w, log_det, scale, offset):
    """expv_diag[b,k,r] = scale[k,r]*(-0.5*(log_det[k,r] + diff + D*log(pi))) + offset[k,r]

    with diff[b,k,r] = sum_d (x[b,r,d] - mu[k,r,d])^2 * w[k,r,d]  (r_mu == r_sample).
    Batched over R in the grid: R small lane-dense matmuls instead of the full
    (BR, KR) GEMM (which does R-fold more work than the E-step consumes).
    """
    B, R, D = x.shape
    K = mu.shape[0]
    C = 2 * D + 1
    C_pad = _round_up(C, 128)
    K_pad = _round_up(K, 128)
    B_pad = _round_up(B, 8)

    xf = x.astype(jnp.float32)                               # (B,R,D)
    wf = w.astype(jnp.float32)                               # (K,R,D)
    muf = mu.astype(jnp.float32)
    wm = wf * muf
    c = jnp.sum(wm * muf, axis=-1)                           # (K,R)
    a = (-0.5) * scale.astype(jnp.float32)                   # (K,R)
    bvec = (offset.astype(jnp.float32)
            + a * (c + log_det.astype(jnp.float32) + D * np.log(np.pi)))

    xr = jnp.transpose(xf, (1, 0, 2))                        # (R,B,D)
    L = jnp.concatenate([xr * xr, xr, jnp.ones((R, B, 1), jnp.float32)], axis=-1)
    G = jnp.concatenate([a.T[..., None] * jnp.transpose(wf, (1, 0, 2)),
                         (-2.0) * a.T[..., None] * jnp.transpose(wm, (1, 0, 2)),
                         bvec.T[..., None]], axis=-1)        # (R,K,C)

    L = jnp.pad(L, ((0, 0), (0, B_pad - B), (0, C_pad - C)))
    G = jnp.pad(G, ((0, 0), (0, K_pad - K), (0, C_pad - C)))

    out = pl.pallas_call(
        _fused_score_kernel,
        out_shape=jax.ShapeDtypeStruct((R, B_pad, K_pad), jnp.float32),
        grid=(R,),
        in_specs=[
            pl.BlockSpec((None, B_pad, C_pad), lambda r: (r, 0, 0)),
            pl.BlockSpec((None, K_pad, C_pad), lambda r: (r, 0, 0)),
        ],
        out_specs=pl.BlockSpec((None, B_pad, K_pad), lambda r: (r, 0, 0)),
        compiler_params=pltpu.CompilerParams(
            dimension_semantics=("parallel",),
            vmem_limit_bytes=32 * 1024 * 1024,
        ),
    )(L, G)

    out = out[:, :B, :K]                                     # (R,B,K)
    return jnp.transpose(out, (1, 2, 0))                     # (B,K,R)


# ------------------------------- GMM model ----------------------------------

def e_step(samples, pis_old, mu_old, cov_old):
    diag = jnp.diagonal(cov_old, axis1=3, axis2=4)           # (1,K,R,D)
    log_det = jnp.sum(jnp.log(jnp.abs(diag)), axis=-1)       # (1,K,R)
    w = 1.0 / diag                                           # diag inverse
    # Diagonal-only path: the E-step only consumes expv[b,k,r,r]; the per-k
    # normalization is pointwise in (r_mu, r_sample), so diag-then-normalize
    # equals the reference normalize-then-diag.
    expv = gaussian_log_scores_diag(samples, mu_old[0], w[0], log_det[0],
                                    scale=pis_old[0],
                                    offset=jnp.zeros_like(pis_old[0]))
    return expv / jnp.sum(expv, axis=1, keepdims=True)       # (B,K,R)


def m_step(samples, S1_old, S2_old, S3_old, affil, momentum):
    s1 = jnp.sum(affil, axis=0)[None]                                   # (1,K,R)
    S1 = momentum * S1_old + (1.0 - momentum) * s1
    s2 = jnp.einsum('bkr,brd->krd', affil, samples)                     # (K,R,D)
    S2 = momentum * S2_old + (1.0 - momentum) * s2[None]
    s3 = jnp.einsum('bkr,brd,bre->krde', affil, samples, samples)       # (K,R,D,D)
    S3 = momentum * S3_old + (1.0 - momentum) * s3[None]
    phi = S1 / jnp.sum(S1, axis=1, keepdims=True)
    mu = S2 / S1[..., None]
    mu = mu / jnp.maximum(jnp.linalg.norm(mu, ord=2, axis=3, keepdims=True), 1e-12)
    S11 = S1[..., None, None]
    term1 = S3 / S11
    term2 = (S2[..., :, None] * S2[..., None, :]) / (S11 * S11)
    sigma = term1 - term2
    return mu, phi, sigma, S1, S2, S3


def mixture_forward(samples, params, momentum):
    B, R, D = samples.shape
    affil = e_step(samples, params['pis'], params['mu'], params['cov'])
    mu_up, pis_up, cov_up, S1, S2, S3 = m_step(
        samples, params['S1'], params['S2'], params['S3'], affil, momentum)

    eye_d = jnp.eye(D, dtype=jnp.float32)
    cov = cov_up * eye_d                                     # diag-masked (1,K,R,D,D)
    diag = jnp.diagonal(cov, axis1=3, axis2=4)
    log_det = jnp.sum(jnp.log(jnp.abs(diag)), axis=-1)       # (1,K,R)
    w = 1.0 / diag
    # expv = log(pis) + (-0.5*(log_det + diff + D*log(pi)))   (folded into G)
    expv = gaussian_log_scores(samples, mu_up[0], w[0], log_det[0],
                               scale=jnp.ones_like(pis_up[0]),
                               offset=jnp.log(pis_up)[0])
    exp1 = affil[:, :, :, None] * expv                       # (B,K,R,R)
    out1 = jnp.sum(exp1, axis=1)[:, None]                    # (B,1,R,R)
    iden = jnp.eye(R, dtype=jnp.float32)[None, None]
    out3 = out1 - iden
    gamma_mean = jnp.mean(affil, axis=0)[None]               # (1,K,R)
    out2 = jnp.sum(jnp.log(gamma_mean) * gamma_mean, axis=1)[:, None]  # (1,1,R)
    return out1, out2, out3, S1, S2, S3, mu_up, pis_up, cov, affil


def gmm_forward(inputs, params, n_rots, momentum):
    N = inputs.shape[0]
    samples = inputs.reshape(n_rots, N // n_rots, -1).transpose(1, 0, 2)  # (B,R,D)
    out1, out2, out3, S1, S2, S3, Mu, Pis, Cov, gamma = mixture_forward(
        samples, params, momentum)
    o1 = jnp.diagonal(out1, axis1=2, axis2=3)                # (B,1,R)
    o1 = jnp.mean(o1, axis=0)[None]                          # (1,1,R)
    o3 = jnp.mean(jnp.sum(out3, axis=3), axis=0)[None]       # (1,1,R)
    out = jnp.sum(-o1 + out2 + o3)
    return out, S1, S2, S3, Mu, Pis, Cov, gamma


# --------------------------------- main --------------------------------------

if __name__ == "__main__":
    K, R, D, B = 4, 8, 32, 4        # num_mixtures, n_rots, dimension_embedding, batch
    momentum = 0.9

    key = jax.random.PRNGKey(0)
    ks = jax.random.split(key, 6)
    inputs = jax.random.normal(ks[0], (R * B, D), dtype=jnp.float32)

    # deterministic parameter init (shapes implied by the module's forward)
    mu0 = jax.random.normal(ks[1], (1, K, R, D), dtype=jnp.float32)
    pis0 = jax.nn.softmax(jax.random.normal(ks[2], (1, K, R), dtype=jnp.float32), axis=1)
    diag0 = 1.0 + 0.5 * jax.random.uniform(ks[3], (1, K, R, D), dtype=jnp.float32)
    cov0 = diag0[..., :, None] * jnp.eye(D, dtype=jnp.float32)          # (1,K,R,D,D)
    S1_0 = 1.0 + jax.random.uniform(ks[4], (1, K, R), dtype=jnp.float32)
    S2_0 = 0.1 * jax.random.normal(ks[5], (1, K, R, D), dtype=jnp.float32)
    S3_0 = (S1_0[..., None, None] * (0.5 * jnp.eye(D, dtype=jnp.float32))
            + S2_0[..., :, None] * S2_0[..., None, :] / S1_0[..., None, None])
    params = dict(mu=mu0, pis=pis0, cov=cov0, S1=S1_0, S2=S2_0, S3=S3_0)

    fwd = jax.jit(lambda x: gmm_forward(x, params, R, momentum))
    outs = fwd(inputs)
    jax.block_until_ready(outs)
    print("KERNEL_OK")
</pallas_src>

<mosaic_0001>
module attributes {stable_mosaic.version = 11 : i64} {
  func.func @_fused_score_kernel(%arg0: i32, %arg1: memref<1x8x128xf32, #tpu.memory_space<vmem>>, %arg2: memref<1x128x128xf32, #tpu.memory_space<vmem>>, %arg3: memref<1x8x128xf32, #tpu.memory_space<vmem>>) attributes {dimension_semantics = [#tpu.dimension_semantics<parallel>], iteration_bounds = array<i64: 8>, scalar_prefetch = 0 : i64, scratch_operands = 0 : i64, tpu.core_type = #tpu.core_type<tc>, window_params = [{transform_indices = @transform_0, window_bounds = array<i64: 1, 8, 128>}, {transform_indices = @transform_1, window_bounds = array<i64: 1, 128, 128>}, {transform_indices = @transform_2, window_bounds = array<i64: 1, 8, 128>}]} {
    %c0 = arith.constant 0 : index
    %c0_0 = arith.constant 0 : index
    %c0_1 = arith.constant 0 : index
    %0 = vector.load %arg1[%c0, %c0_0, %c0_1] : memref<1x8x128xf32, #tpu.memory_space<vmem>>, vector<1x8x128xf32>
    %1 = vector.shape_cast %0 : vector<1x8x128xf32> to vector<8x128xf32>
    %c0_2 = arith.constant 0 : index
    %c0_3 = arith.constant 0 : index
    %c0_4 = arith.constant 0 : index
    %2 = vector.load %arg2[%c0_2, %c0_3, %c0_4] : memref<1x128x128xf32, #tpu.memory_space<vmem>>, vector<1x128x128xf32>
    %3 = vector.shape_cast %2 : vector<1x128x128xf32> to vector<128x128xf32>
    %cst = arith.constant dense<0.000000e+00> : vector<8x128xf32>
    %4 = tpu.matmul %1, %3, %cst {dimension_numbers = #tpu.dot_dimension_numbers<[1], [1], [0], [0], [0, 0, 1, 0], [], []>} : vector<8x128xf32>, vector<128x128xf32>, vector<8x128xf32> -> vector<8x128xf32>
    %c0_5 = arith.constant 0 : index
    %c0_6 = arith.constant 0 : index
    %c0_7 = arith.constant 0 : index
    %5 = vector.load %arg3[%c0_5, %c0_6, %c0_7] : memref<1x8x128xf32, #tpu.memory_space<vmem>>, vector<1x8x128xf32>
    %6 = vector.shape_cast %5 : vector<1x8x128xf32> to vector<8x128xf32>
    %7 = vector.shape_cast %4 : vector<8x128xf32> to vector<1x8x128xf32>
    tpu.vector_store %arg3[%c0_5, %c0_6, %c0_7], %7 {strides = array<i32>} : memref<1x8x128xf32, #tpu.memory_space<vmem>>, vector<1x8x128xf32>,
    return
  }
  func.func @transform_0(%arg0: i32) -> (i32, i32, i32) {
    %c0_i32 = arith.constant 0 : i32
    %c0_i32_0 = arith.constant 0 : i32
    %c0_i32_1 = arith.constant 0 : i32
    return %arg0, %c0_i32, %c0_i32_0 : i32, i32, i32
  }
  func.func @transform_1(%arg0: i32) -> (i32, i32, i32) {
    %c0_i32 = arith.constant 0 : i32
    %c0_i32_0 = arith.constant 0 : i32
    %c0_i32_1 = arith.constant 0 : i32
    return %arg0, %c0_i32, %c0_i32_0 : i32, i32, i32
  }
  func.func @transform_2(%arg0: i32) -> (i32, i32, i32) {
    %c0_i32 = arith.constant 0 : i32
    %c0_i32_0 = arith.constant 0 : i32
    %c0_i32_1 = arith.constant 0 : i32
    return %arg0, %c0_i32, %c0_i32_0 : i32, i32, i32
  }
}

module attributes {stable_mosaic.version = 11 : i64} {
  func.func @_fused_score_kernel(%arg0: i32, %arg1: memref<32x128xf32, #tpu.memory_space<vmem>>, %arg2: memref<128x128xf32, #tpu.memory_space<vmem>>, %arg3: memref<32x128xf32, #tpu.memory_space<vmem>>) attributes {dimension_semantics = [#tpu.dimension_semantics<parallel>], iteration_bounds = array<i64: 1>, scalar_prefetch = 0 : i64, scratch_operands = 0 : i64, tpu.core_type = #tpu.core_type<tc>, window_params = [{transform_indices = @transform_0, window_bounds = array<i64: 32, 128>}, {pipeline_mode = #tpu.pipeline_mode<synchronous>, transform_indices = @transform_1, window_bounds = array<i64: 128, 128>}, {transform_indices = @transform_2, window_bounds = array<i64: 32, 128>}]} {
    %c0 = arith.constant 0 : index
    %c0_0 = arith.constant 0 : index
    %0 = vector.load %arg1[%c0, %c0_0] : memref<32x128xf32, #tpu.memory_space<vmem>>, vector<32x128xf32>
    %c0_1 = arith.constant 0 : index
    %c0_2 = arith.constant 0 : index
    %1 = vector.load %arg2[%c0_1, %c0_2] : memref<128x128xf32, #tpu.memory_space<vmem>>, vector<128x128xf32>
    %cst = arith.constant dense<0.000000e+00> : vector<32x128xf32>
    %2 = tpu.matmul %0, %1, %cst {dimension_numbers = #tpu.dot_dimension_numbers<[1], [1], [0], [0], [0, 0, 1, 0], [], []>} : vector<32x128xf32>, vector<128x128xf32>, vector<32x128xf32> -> vector<32x128xf32>
    %c0_3 = arith.constant 0 : index
    %c0_4 = arith.constant 0 : index
    %3 = vector.load %arg3[%c0_3, %c0_4] : memref<32x128xf32, #tpu.memory_space<vmem>>, vector<32x128xf32>
    tpu.vector_store %arg3[%c0_3, %c0_4], %2 {strides = array<i32>} : memref<32x128xf32, #tpu.memory_space<vmem>>, vector<32x128xf32>,
    return
  }
  func.func @transform_0(%arg0: i32) -> (i32, i32) {
    %c0_i32 = arith.constant 0 : i32
    %c0_i32_0 = arith.constant 0 : i32
    return %arg0, %c0_i32 : i32, i32
  }
  func.func @transform_1(%arg0: i32) -> (i32, i32) {
    %c0_i32 = arith.constant 0 : i32
    %c0_i32_0 = arith.constant 0 : i32
    %c0_i32_1 = arith.constant 0 : i32
    return %c0_i32, %c0_i32_0 : i32, i32
  }
  func.func @transform_2(%arg0: i32) -> (i32, i32) {
    %c0_i32 = arith.constant 0 : i32
    %c0_i32_0 = arith.constant 0 : i32
    return %arg0, %c0_i32 : i32, i32
  }
}

</mosaic_0001>

<bundles_post_ra>
// kernel: mul.55
= control target key start
LH: loop header
LB: loop body
LE: loop exit
PB: predicated region body
PF: predicated region fallthrough
CT: control target
= control target key end

     0   :  { %3 = vsyncpa [#allocation1], 0  ;;  %s210_s0 = inlined_call_operand.hbm [shape: f32[8,4,32], index: 0, kind: input, shape index: {}, may-alias: {0,1}]   ;;  %s211_s1 = inlined_call_operand.hbm [shape: f32[8,4,32], index: 1, kind: input, shape index: {}, may-alias: {0,1}]   ;;  %s212_s2 = inlined_call_operand.vmem [shape: f32[8,4,32], index: 2, kind: output, shape index: {}]  }
   0x1   :  { %4 = vsyncpa [#allocation3], 0  ;;  %s161_s9 = smov [#allocation0]  }
   0x2   :  { %s8_s10 = sshll.u32 %s161_s9, 4  ;;  %s9_s10 = int_to_ptr.vmem [resolvable:$true] %s8_s10 }
   0x3   :  { %s125_s11 = scalar_lea.vmem %s9_s10, 512  ;;  %p130_p1 = scmp.lt.s32.totalorder %s9_s10, %s9_s10 }
   0x4   :  { %p126_p0 = scmp.ne.s32.totalorder %s9_s10, %s125_s11  ;;  %p131_p2 = scmp.lt.s32.totalorder %s125_s11, %s125_s11 }
   0x6   :  { %p132_p3 = por %p131_p2, %p130_p1 }
   0x8   :  { %p133_p4 = pnand %p132_p3, %p126_p0 }
   0xa   :  { %136 = shalt.err (!%p133_p4)
}
   0xb   :  { %s162_s12 = smov 64   ;;  %s163_s13 = smov 4  }
   0xc   :  { %14 = dma.hbm_to_vmem [thread:$0]  %s210_s0, 512, %s9_s10, [#allocation1], %s162_s12, %s162_s12, %s163_s13  }
   0xd   :  { %s164_s0 = smov [#allocation2]  }
   0xe   :  { %s18_s16 = sshll.u32 %s164_s0, 4  ;;  %s19_s16 = int_to_ptr.vmem [resolvable:$true] %s18_s16 }
   0xf   :  { %s145_s17 = scalar_lea.vmem %s19_s16, 512  ;;  %p150_p6 = scmp.lt.s32.totalorder %s19_s16, %s19_s16 }
  0x10   :  { %p146_p5 = scmp.ne.s32.totalorder %s19_s16, %s145_s17  ;;  %p151_p7 = scmp.lt.s32.totalorder %s145_s17, %s145_s17 }
  0x12   :  { %p152_p8 = por %p151_p7, %p150_p6 }
  0x14   :  { %p153_p9 = pnand %p152_p8, %p146_p5 }
  0x16   :  { %156 = shalt.err (!%p153_p9)
}
  0x17   :  { %24 = dma.hbm_to_vmem [thread:$0]  %s211_s1, 512, %s19_s16, [#allocation3], %s162_s12, %s162_s12, %s163_s13  }
  0x18   :  { %157 = dma.done.wait [#allocation1], 512  }
  0x19   :  { %158 = vsyncadd [#allocation1], 4294966784 }
  0x1a   :  { %159 = dma.done.wait [#allocation3], 512  }
  0x1b   :  { %160 = vsyncadd [#allocation3], 4294966784  ;;  %v27_v0 = vld [vmem:[#allocation0] sm:$0xf]  ;;  %v35_v2 = vld [vmem:[#allocation0 + $0x4] sm:$0xf] }
  0x1c   :  { %v28_v1 = vld [vmem:[#allocation2] sm:$0xf]  ;;  %v37_v4 = vld [vmem:[#allocation2 + $0x4] sm:$0xf]  ;;  %v45_v5 = vld [vmem:[#allocation0 + $0x8] sm:$0xf] }
  0x1d   :  { %v31_v3 = vmul.f32 %v28_v1, %v27_v0  ;;  %v47_v6 = vld [vmem:[#allocation2 + $0x8] sm:$0xf]  ;;  %v40_v7 = vmul.f32 %v37_v4, %v35_v2  ;;  %v55_v9 = vld [vmem:[#allocation0 + $0xc] sm:$0xf]  ;;  %v65_v11 = vld [vmem:[#allocation0 + $0x10] sm:$0xf] }
  0x1e   :  { %v50_v8 = vmul.f32 %v47_v6, %v45_v5  ;;  %v57_v10 = vld [vmem:[#allocation2 + $0xc] sm:$0xf]  ;;  %v67_v13 = vld [vmem:[#allocation2 + $0x10] sm:$0xf]  ;;  %v75_v14 = vld [vmem:[#allocation0 + $0x14] sm:$0xf] }
  0x1f   :  { %33 = vst [vmem:[%s212_s2] sm:$0xf] %v31_v3  ;;  %v60_v12 = vmul.f32 %v57_v10, %v55_v9  ;;  %v77_v15 = vld [vmem:[#allocation2 + $0x14] sm:$0xf]  ;;  %106 = vst [vmem:[%s212_s2 + $0x4] sm:$0xf] %v40_v7  ;;  %v70_v16 = vmul.f32 %v67_v13, %v65_v11 }
  0x20   :  { %107 = vst [vmem:[%s212_s2 + $0x8] sm:$0xf] %v50_v8  ;;  %v80_v17 = vmul.f32 %v77_v15, %v75_v14  ;;  %v85_v18 = vld [vmem:[#allocation0 + $0x18] sm:$0xf]  ;;  %v95_v20 = vld [vmem:[#allocation0 + $0x1c] sm:$0xf] }
  0x21   :  { %v87_v19 = vld [vmem:[#allocation2 + $0x18] sm:$0xf]  ;;  %108 = vst [vmem:[%s212_s2 + $0xc] sm:$0xf] %v60_v12  ;;  %v97_v22 = vld [vmem:[#allocation2 + $0x1c] sm:$0xf] }
  0x22   :  { %v90_v21 = vmul.f32 %v87_v19, %v85_v18  ;;  %109 = vst [vmem:[%s212_s2 + $0x10] sm:$0xf] %v70_v16  ;;  %110 = vst [vmem:[%s212_s2 + $0x14] sm:$0xf] %v80_v17  ;;  %v100_v23 = vmul.f32 %v97_v22, %v95_v20 }
  0x24   :  { %111 = vst [vmem:[%s212_s2 + $0x18] sm:$0xf] %v90_v21  ;;  %112 = vst [vmem:[%s212_s2 + $0x1c] sm:$0xf] %v100_v23 }
  0x25   :  { %104 = vsyncpa [#allocation1], 1 }
  0x26   :  { %105 = vsyncpa [#allocation3], 1 }

// kernel: _lambda_.2
= control target key start
LH: loop header
LB: loop body
LE: loop exit
PB: predicated region body
PF: predicated region fallthrough
CT: control target
= control target key end

     0   :  { %s411_s9 = smov 0   ;;  %s453_s0 = inlined_call_operand.vmem [shape: f32[8,8,128], index: 0, kind: input, shape index: {}]   ;;  %s454_s1 = inlined_call_operand.vmem [shape: f32[8,128,128], index: 1, kind: input, shape index: {}]   ;;  %s455_s2 = inlined_call_operand.vmem [shape: f32[8,8,128], index: 2, kind: output, shape index: {}]  }
   0x1 LB: > { %s312_s10 = sadd.s32 4294967295, %s392_s9   ;;  %p316_p0 = scmp.ge.s32.totalorder %s392_s9, 1  ;;  %s392_s9 = sphi %s411_s9, %s12_s9  }
   0x2   : > { %p121_p1 = scmp.lt.s32.totalorder %s392_s9, 9 }
   0x4   : > { %p122_p2 = pnand %p316_p0, %p121_p1 }
   0x5   : > { %p146_p3 = scmp.lt.s32.totalorder (!%p122_p2), %s312_s10, 7 }
   0x6   : > { %125 = sbr.rel (%p122_p2) target bundleno = 273 (0x111), region = 28 }
   0xb   : > { %v394_v0 = vmov 0.0   ;;  %vm395_vm0 = vmmov 0   ;;  %s457_s10 = smov (!%p146_p3, %s312_s10), 7 }
   0xc   : > { %341 = vmatprep.subr.mxu0 %v394_v0  ;;  %373 = vmatprep.mubr.msk.f32.mxu0 %vm395_vm0, %v394_v0  ;;  %s323_s11 = sshll.u32 %s457_s10, 7  ;;  %s317_s15 = sshll.u32 %s457_s10, 3 }
   0xd   : > { %s425_s14 = scalar_lea.vmem %s454_s1, %s323_s11  ;;  %s149_s18 = scalar_lea.vmem %s453_s0, %s317_s15 }
   0xe   : > { %v175_v1 = vld [vmem:[%s425_s14 + $0x78] sm:$0xff]  ;;  %v174_v2 = vld [vmem:[%s425_s14 + $0x70] sm:$0xff]  ;;  %v173_v3 = vld [vmem:[%s425_s14 + $0x68] sm:$0xff]  ;;  %s158_s21 = scalar_lea.vmem %s455_s2, %s317_s15 }
   0xf   : > { %342 = vmatpush3.xpose.msra.mxu0 %v175_v1  ;;  %v172_v4 = vld [vmem:[%s425_s14 + $0x60] sm:$0xff]  ;;  %v171_v5 = vld [vmem:[%s425_s14 + $0x58] sm:$0xff]  ;;  %v170_v6 = vld [vmem:[%s425_s14 + $0x50] sm:$0xff] }
  0x10   : > { %343 = vmatprep.subr.mxu0 %v394_v0  ;;  %v169_v7 = vld [vmem:[%s425_s14 + $0x48] sm:$0xff]  ;;  %v168_v8 = vld [vmem:[%s425_s14 + $0x40] sm:$0xff]  ;;  %v167_v9 = vld [vmem:[%s425_s14 + $0x38] sm:$0xff] }
  0x11   : > { %v166_v10 = vld [vmem:[%s425_s14 + $0x30] sm:$0xff]  ;;  %v165_v11 = vld [vmem:[%s425_s14 + $0x28] sm:$0xff]  ;;  %v164_v12 = vld [vmem:[%s425_s14 + $0x20] sm:$0xff] }
  0x12   : > { %v163_v13 = vld [vmem:[%s425_s14 + $0x18] sm:$0xff]  ;;  %v162_v14 = vld [vmem:[%s425_s14 + $0x10] sm:$0xff]  ;;  %v161_v15 = vld [vmem:[%s425_s14 + $0x8] sm:$0xff] }
  0x13   : > { %344 = vmatpush3.xpose.msra.mxu0 %v174_v2  ;;  %v160_v16 = vld [vmem:[%s425_s14] sm:$0xff] }
  0x14   : > { %345 = vmatprep.subr.mxu0 %v394_v0  ;;  %v159_v17 = vld [vmem:[%s149_s18] sm:$0xff] }
  0x17   : > { %346 = vmatpush3.xpose.msra.mxu0 %v173_v3 }
  0x18   : > { %347 = vmatprep.subr.mxu0 %v394_v0 }
  0x1b   : > { %348 = vmatpush3.xpose.msra.mxu0 %v172_v4 }
  0x1c   : > { %349 = vmatprep.subr.mxu0 %v394_v0 }
  0x1f   : > { %350 = vmatpush3.xpose.msra.mxu0 %v171_v5 }
  0x20   : > { %351 = vmatprep.subr.mxu0 %v394_v0 }
  0x23   : > { %352 = vmatpush3.xpose.msra.mxu0 %v170_v6 }
  0x24   : > { %353 = vmatprep.subr.mxu0 %v394_v0 }
  0x27   : > { %354 = vmatpush3.xpose.msra.mxu0 %v169_v7 }
  0x28   : > { %355 = vmatprep.subr.mxu0 %v394_v0 }
  0x2b   : > { %356 = vmatpush3.xpose.msra.mxu0 %v168_v8 }
  0x2c   : > { %357 = vmatprep.subr.mxu0 %v394_v0 }
  0x2f   : > { %358 = vmatpush3.xpose.msra.mxu0 %v167_v9 }
  0x30   : > { %359 = vmatprep.subr.mxu0 %v394_v0 }
  0x33   : > { %360 = vmatpush3.xpose.msra.mxu0 %v166_v10 }
  0x34   : > { %361 = vmatprep.subr.mxu0 %v394_v0 }
  0x37   : > { %362 = vmatpush3.xpose.msra.mxu0 %v165_v11 }
  0x38   : > { %363 = vmatprep.subr.mxu0 %v394_v0 }
  0x3b   : > { %364 = vmatpush3.xpose.msra.mxu0 %v164_v12 }
  0x3c   : > { %365 = vmatprep.subr.mxu0 %v394_v0 }
  0x3f   : > { %366 = vmatpush3.xpose.msra.mxu0 %v163_v13 }
  0x40   : > { %367 = vmatprep.subr.mxu0 %v394_v0 }
  0x43   : > { %368 = vmatpush3.xpose.msra.mxu0 %v162_v14 }
  0x44   : > { %369 = vmatprep.subr.mxu0 %v394_v0 }
  0x47   : > { %370 = vmatpush3.xpose.msra.mxu0 %v161_v15 }
  0x48   : > { %371 = vmatprep.subr.mxu0 %v394_v0 }
  0x4b   : > { %372 = vmatpush3.xpose.msra.mxu0 %v160_v16 }
  0x4e   : > { %374 = vmatmul.mubr.f32.vlgmr.msra.gmra.mxu0 %v159_v17 }
 0x10e   : > { %v242_v18 = vpop.f32.mrf.mxu0 }
 0x10f   : > { %246 = vst [vmem:[%s158_s21] sm:$0xff] %v242_v18 }
 0x110   : > { %v375_v19 = vpop.f32.mrf.mxu0 }
 0x111 PF: > { %s12_s9 = sadd.s32 1, %s392_s9  }
 0x112   : > { %p9_p4 = scmp.ge.s32.totalorder %s12_s9, 10  }
 0x114   :  { %11 = sbr.rel (!%p9_p4) target bundleno = 1 (0x1), region = 61 }

// kernel: _lambda_.3
= control target key start
LH: loop header
LB: loop body
LE: loop exit
PB: predicated region body
PF: predicated region fallthrough
CT: control target
= control target key end

     0   :  { %s301_s1 = inlined_call_operand.vmem [shape: f32[128,128], index: 1, kind: input, shape index: {}]   ;;  %s302_s0 = inlined_call_operand.vmem [shape: f32[32,128], index: 0, kind: input, shape index: {}]   ;;  %s303_s2 = inlined_call_operand.vmem [shape: f32[32,128], index: 2, kind: output, shape index: {}]  }
   0x1   :  { %v30_v0 = vld [vmem:[%s301_s1 + $0x78] sm:$0xff]  ;;  %v29_v1 = vld [vmem:[%s301_s1 + $0x70] sm:$0xff]  ;;  %v28_v2 = vld [vmem:[%s301_s1 + $0x68] sm:$0xff] }
   0x2   :  { %144 = vmatprep.subr.mxu0 %v30_v0  ;;  %182 = vmatprep.subr.mxu1 %v30_v0  ;;  %v11_v3 = vld [vmem:[%s302_s0] sm:$0xff]  ;;  %v13_v4 = vld [vmem:[%s302_s0 + $0x10] sm:$0xff]  ;;  %v26_v6 = vld [vmem:[%s301_s1 + $0x58] sm:$0xff] }
   0x3   :  { %145 = vmatpush3.xpose.msra.mxu0 %v30_v0  ;;  %198 = vmatpush3.xpose.msra.mxu1 %v30_v0  ;;  %v27_v5 = vld [vmem:[%s301_s1 + $0x60] sm:$0xff]  ;;  %v25_v7 = vld [vmem:[%s301_s1 + $0x50] sm:$0xff]  ;;  %v24_v8 = vld [vmem:[%s301_s1 + $0x48] sm:$0xff] }
   0x4   :  { %146 = vmatprep.subr.mxu0 %v29_v1  ;;  %183 = vmatprep.subr.mxu1 %v29_v1  ;;  %v23_v9 = vld [vmem:[%s301_s1 + $0x40] sm:$0xff]  ;;  %v22_v10 = vld [vmem:[%s301_s1 + $0x38] sm:$0xff]  ;;  %v21_v11 = vld [vmem:[%s301_s1 + $0x30] sm:$0xff] }
   0x5   :  { %176 = vmatprep.mubr.f32.mxu0 %v11_v3  ;;  %179 = vmatprep.mubr.f32.mxu1 %v13_v4  ;;  %v20_v12 = vld [vmem:[%s301_s1 + $0x28] sm:$0xff]  ;;  %v19_v13 = vld [vmem:[%s301_s1 + $0x20] sm:$0xff]  ;;  %v18_v14 = vld [vmem:[%s301_s1 + $0x18] sm:$0xff] }
   0x6   :  { %v17_v15 = vld [vmem:[%s301_s1 + $0x10] sm:$0xff]  ;;  %v16_v16 = vld [vmem:[%s301_s1 + $0x8] sm:$0xff]  ;;  %v15_v17 = vld [vmem:[%s301_s1] sm:$0xff] }
   0x7   :  { %147 = vmatpush3.xpose.msra.mxu0 %v29_v1  ;;  %199 = vmatpush3.xpose.msra.mxu1 %v29_v1  ;;  %v12_v18 = vld [vmem:[%s302_s0 + $0x8] sm:$0xff]  ;;  %v14_v19 = vld [vmem:[%s302_s0 + $0x18] sm:$0xff] }
   0x8   :  { %148 = vmatprep.subr.mxu0 %v28_v2  ;;  %184 = vmatprep.subr.mxu1 %v28_v2 }
   0xb   :  { %149 = vmatpush3.xpose.msra.mxu0 %v28_v2  ;;  %200 = vmatpush3.xpose.msra.mxu1 %v28_v2 }
   0xc   :  { %150 = vmatprep.subr.mxu0 %v27_v5  ;;  %185 = vmatprep.subr.mxu1 %v27_v5 }
   0xf   :  { %151 = vmatpush3.xpose.msra.mxu0 %v27_v5  ;;  %201 = vmatpush3.xpose.msra.mxu1 %v27_v5 }
  0x10   :  { %152 = vmatprep.subr.mxu0 %v26_v6  ;;  %186 = vmatprep.subr.mxu1 %v26_v6 }
  0x13   :  { %153 = vmatpush3.xpose.msra.mxu0 %v26_v6  ;;  %202 = vmatpush3.xpose.msra.mxu1 %v26_v6 }
  0x14   :  { %154 = vmatprep.subr.mxu0 %v25_v7  ;;  %187 = vmatprep.subr.mxu1 %v25_v7 }
  0x17   :  { %155 = vmatpush3.xpose.msra.mxu0 %v25_v7  ;;  %203 = vmatpush3.xpose.msra.mxu1 %v25_v7 }
  0x18   :  { %156 = vmatprep.subr.mxu0 %v24_v8  ;;  %188 = vmatprep.subr.mxu1 %v24_v8 }
  0x1b   :  { %157 = vmatpush3.xpose.msra.mxu0 %v24_v8  ;;  %204 = vmatpush3.xpose.msra.mxu1 %v24_v8 }
  0x1c   :  { %158 = vmatprep.subr.mxu0 %v23_v9  ;;  %189 = vmatprep.subr.mxu1 %v23_v9 }
  0x1f   :  { %159 = vmatpush3.xpose.msra.mxu0 %v23_v9  ;;  %205 = vmatpush3.xpose.msra.mxu1 %v23_v9 }
  0x20   :  { %160 = vmatprep.subr.mxu0 %v22_v10  ;;  %190 = vmatprep.subr.mxu1 %v22_v10 }
  0x23   :  { %161 = vmatpush3.xpose.msra.mxu0 %v22_v10  ;;  %206 = vmatpush3.xpose.msra.mxu1 %v22_v10 }
  0x24   :  { %162 = vmatprep.subr.mxu0 %v21_v11  ;;  %191 = vmatprep.subr.mxu1 %v21_v11 }
  0x27   :  { %163 = vmatpush3.xpose.msra.mxu0 %v21_v11  ;;  %207 = vmatpush3.xpose.msra.mxu1 %v21_v11 }
  0x28   :  { %164 = vmatprep.subr.mxu0 %v20_v12  ;;  %192 = vmatprep.subr.mxu1 %v20_v12 }
  0x2b   :  { %165 = vmatpush3.xpose.msra.mxu0 %v20_v12  ;;  %208 = vmatpush3.xpose.msra.mxu1 %v20_v12 }
  0x2c   :  { %166 = vmatprep.subr.mxu0 %v19_v13  ;;  %193 = vmatprep.subr.mxu1 %v19_v13 }
  0x2f   :  { %167 = vmatpush3.xpose.msra.mxu0 %v19_v13  ;;  %209 = vmatpush3.xpose.msra.mxu1 %v19_v13 }
  0x30   :  { %168 = vmatprep.subr.mxu0 %v18_v14  ;;  %194 = vmatprep.subr.mxu1 %v18_v14 }
  0x33   :  { %169 = vmatpush3.xpose.msra.mxu0 %v18_v14  ;;  %210 = vmatpush3.xpose.msra.mxu1 %v18_v14 }
  0x34   :  { %170 = vmatprep.subr.mxu0 %v17_v15  ;;  %195 = vmatprep.subr.mxu1 %v17_v15 }
  0x37   :  { %171 = vmatpush3.xpose.msra.mxu0 %v17_v15  ;;  %211 = vmatpush3.xpose.msra.mxu1 %v17_v15 }
  0x38   :  { %172 = vmatprep.subr.mxu0 %v16_v16  ;;  %196 = vmatprep.subr.mxu1 %v16_v16 }
  0x3b   :  { %173 = vmatpush3.xpose.msra.mxu0 %v16_v16  ;;  %212 = vmatpush3.xpose.msra.mxu1 %v16_v16 }
  0x3c   :  { %174 = vmatprep.subr.mxu0 %v15_v17  ;;  %197 = vmatprep.subr.mxu1 %v15_v17 }
  0x3f   :  { %175 = vmatpush3.xpose.msra.mxu0 %v15_v17  ;;  %213 = vmatpush3.xpose.msra.mxu1 %v15_v17 }
  0x42   :  { %177 = vmatmul.mubr.f32.vlgmr.msra.gmra.mxu0 %v12_v18  ;;  %180 = vmatmul.mubr.f32.vlgmr.msra.gmra.mxu1 %v14_v19 }
 0x102   :  { %v178_v20 = vpop.f32.mrf.mxu0  ;;  %v181_v21 = vpop.f32.mrf.mxu1 }
 0x103   :  { %117 = vst [vmem:[%s303_s2 + $0x8] sm:$0xff] %v178_v20  ;;  %119 = vst [vmem:[%s303_s2 + $0x18] sm:$0xff] %v181_v21 }
 0x104   :  { %v97_v22 = vpop.f32.mrf.mxu0  ;;  %v107_v23 = vpop.f32.mrf.mxu1 }
 0x105   :  { %116 = vst [vmem:[%s303_s2] sm:$0xff] %v97_v22  ;;  %118 = vst [vmem:[%s303_s2 + $0x10] sm:$0xff] %v107_v23 }

</bundles_post_ra>
